<compile_context>
chip_gen: v7x
topology: tpu7x:2x2x1
jax: 0.10.0
libtpu: 0.0.40
codegen_flags: <defaults>
</compile_context>

<pallas_src>
import jax
import jax.numpy as jnp
from jax.experimental import pallas as pl
from jax.experimental.pallas import tpu as pltpu

PACK = 8  # max number of edge rows folded into the lane axis


def edge_mlp_kernel(x_ref, w1_ref, b1_ref, w2_ref, b2_ref, w3_ref, b3_ref,
                    o_ref):
    # Layer 1 (input already holds cat[e, s, r] per packed row).
    h = jnp.dot(x_ref[...], w1_ref[...], preferred_element_type=jnp.float32)
    h = jnp.maximum(h + b1_ref[...], 0.0)
    # Layer 2.
    h = jnp.dot(h.astype(w2_ref.dtype), w2_ref[...],
                preferred_element_type=jnp.float32)
    h = jnp.maximum(h + b2_ref[...], 0.0)
    # Output layer.
    y = jnp.dot(h.astype(w3_ref.dtype), w3_ref[...],
                preferred_element_type=jnp.float32)
    o_ref[...] = (y + b3_ref[...]).astype(o_ref.dtype)


def edge_model_forward(edge_attr, sender, receiver, params, *,
                       tm=None, compute_dtype=jnp.bfloat16):
    """Fused EdgeModel MLP.  edge_attr/sender/receiver: [E, D] float32."""
    E, D = edge_attr.shape
    w1, b1, w2, b2, w3, b3 = params
    hidden = w1.shape[1]
    embed = w3.shape[1]
    D3 = 3 * D
    cdt = jnp.dtype(compute_dtype)

    # Adaptive pack factor: keep packed feature widths / block-diag weights
    # reasonable even if someone calls this with large feature dims.
    P = PACK
    while P > 1 and max(P * D3, P * hidden, P * embed) > 1024:
        P //= 2

    # Row tile: big enough to amortize the ~0.35us/grid-step overhead, shrunk
    # only to keep >= 2 grid steps (megacore) when E is small.
    if tm is None:
        tm = 4096
        while tm > 8 * P and pl.cdiv(E, tm) < 2:
            tm //= 2
    assert tm % (8 * P) == 0, "row tile must be a multiple of 8*PACK"

    grid_rows = pl.cdiv(E, tm)
    E_pad = grid_rows * tm

    # cat[e, s, r] + zero-pad rows + cast + lane-pack (one fused XLA pass).
    x = jnp.concatenate([edge_attr, sender, receiver], axis=1)
    if E_pad != E:
        x = jnp.pad(x, ((0, E_pad - E), (0, 0)))
    x_p = x.astype(cdt).reshape(E_pad // P, P * D3)

    # Block-diagonal weights keep the P packed rows independent.
    eye = jnp.eye(P, dtype=cdt)

    def bd(w):        # [in, out] -> [P*in, P*out]
        return jnp.kron(eye, w.astype(cdt))

    def tile_b(b):    # [1, out] -> [1, P*out], f32
        return jnp.tile(b.astype(jnp.float32).reshape(1, -1), (1, P))

    w1_bd, w2_bd, w3_bd = bd(w1), bd(w2), bd(w3)
    b1_t, b2_t, b3_t = tile_b(b1), tile_b(b2), tile_b(b3)

    row_block = tm // P

    def full_spec(a):
        return pl.BlockSpec(a.shape, lambda i: (0, 0))

    flops = 2 * E_pad * P * (D3 * hidden + hidden * hidden + hidden * embed)
    bytes_accessed = (E_pad * D3 * cdt.itemsize            # packed input
                      + E_pad * embed * 4                   # f32 output
                      + (w1_bd.size + w2_bd.size + w3_bd.size) * cdt.itemsize
                      + 4 * (b1_t.size + b2_t.size + b3_t.size))

    out_p = pl.pallas_call(
        edge_mlp_kernel,
        out_shape=jax.ShapeDtypeStruct((E_pad // P, P * embed), jnp.float32),
        grid_spec=pltpu.PrefetchScalarGridSpec(
            num_scalar_prefetch=0,
            grid=(grid_rows,),
            in_specs=[
                pl.BlockSpec((row_block, P * D3), lambda i: (i, 0)),
                full_spec(w1_bd), full_spec(b1_t),
                full_spec(w2_bd), full_spec(b2_t),
                full_spec(w3_bd), full_spec(b3_t),
            ],
            out_specs=pl.BlockSpec((row_block, P * embed), lambda i: (i, 0)),
        ),
        compiler_params=pltpu.CompilerParams(
            dimension_semantics=("parallel",)),
        cost_estimate=pl.CostEstimate(
            flops=flops, transcendentals=0, bytes_accessed=bytes_accessed),
    )(x_p, w1_bd, b1_t, w2_bd, b2_t, w3_bd, b3_t)

    # Unpack lanes back to rows (free row-major reshape) and drop padding.
    return out_p.reshape(E_pad, embed)[:E]


def init_edge_model_params(key, input_dim, hidden_dim, embed_dim):
    """Mirrors the PyTorch module: xavier_normal_ weights, default bias init.
    Weights stored as [in, out] so the kernel computes y = x @ W + b."""
    def xavier_normal(k, fan_in, fan_out):
        std = (2.0 / (fan_in + fan_out)) ** 0.5
        return std * jax.random.normal(k, (fan_in, fan_out), jnp.float32)

    def bias_init(k, fan_in, fan_out):
        bound = 1.0 / (fan_in ** 0.5)
        return jax.random.uniform(k, (1, fan_out), jnp.float32, -bound, bound)

    in1 = input_dim * 2 + input_dim
    k = jax.random.split(key, 6)
    w1 = xavier_normal(k[0], in1, hidden_dim)
    b1 = bias_init(k[1], in1, hidden_dim)
    w2 = xavier_normal(k[2], hidden_dim, hidden_dim)
    b2 = bias_init(k[3], hidden_dim, hidden_dim)
    w3 = xavier_normal(k[4], hidden_dim, embed_dim)
    b3 = bias_init(k[5], hidden_dim, embed_dim)
    return (w1, b1, w2, b2, w3, b3)


def edge_model_reference(edge_attr, sender, receiver, params):
    """Pure-JAX reference matching the kernel's bf16-in / f32-accumulate math."""
    w1, b1, w2, b2, w3, b3 = params
    bf = jnp.bfloat16
    x = jnp.concatenate([edge_attr, sender, receiver], axis=1).astype(bf)
    h = jnp.dot(x, w1.astype(bf), preferred_element_type=jnp.float32) + b1
    h = jnp.maximum(h, 0.0)
    h = jnp.dot(h.astype(bf), w2.astype(bf),
                preferred_element_type=jnp.float32) + b2
    h = jnp.maximum(h, 0.0)
    return jnp.dot(h.astype(bf), w3.astype(bf),
                   preferred_element_type=jnp.float32) + b3


if __name__ == "__main__":
    input_dim, hidden_dim, embed_dim = 8, 32, 16
    E = 128  # number of edges

    key = jax.random.PRNGKey(0)
    kp, ke, ks, kr = jax.random.split(key, 4)

    params = init_edge_model_params(kp, input_dim, hidden_dim, embed_dim)
    edge_attr = jax.random.normal(ke, (E, input_dim), jnp.float32)
    sender = jax.random.normal(ks, (E, input_dim), jnp.float32)
    receiver = jax.random.normal(kr, (E, input_dim), jnp.float32)

    fwd = jax.jit(lambda e, s, r: edge_model_forward(e, s, r, params))
    out = jax.block_until_ready(fwd(edge_attr, sender, receiver))

    ref = edge_model_reference(edge_attr, sender, receiver, params)
    assert out.shape == (E, embed_dim)
    assert jnp.allclose(out, ref, atol=2e-3, rtol=2e-3), "mismatch vs reference"

    print("KERNEL_OK")
</pallas_src>

<mosaic_0001>
module attributes {stable_mosaic.version = 11 : i64} {
  func.func @edge_mlp_kernel(%arg0: i32, %arg1: memref<8x192xbf16, #tpu.memory_space<vmem>>, %arg2: memref<192x256xbf16, #tpu.memory_space<vmem>>, %arg3: memref<1x256xf32, #tpu.memory_space<vmem>>, %arg4: memref<256x256xbf16, #tpu.memory_space<vmem>>, %arg5: memref<1x256xf32, #tpu.memory_space<vmem>>, %arg6: memref<256x128xbf16, #tpu.memory_space<vmem>>, %arg7: memref<1x128xf32, #tpu.memory_space<vmem>>, %arg8: memref<8x128xf32, #tpu.memory_space<vmem>>) attributes {dimension_semantics = [#tpu.dimension_semantics<parallel>], iteration_bounds = array<i64: 2>, scalar_prefetch = 0 : i64, scratch_operands = 0 : i64, tpu.core_type = #tpu.core_type<tc>, window_params = [{transform_indices = @transform_0, window_bounds = array<i64: 8, 192>}, {pipeline_mode = #tpu.pipeline_mode<synchronous>, transform_indices = @transform_1, window_bounds = array<i64: 192, 256>}, {pipeline_mode = #tpu.pipeline_mode<synchronous>, transform_indices = @transform_2, window_bounds = array<i64: 1, 256>}, {pipeline_mode = #tpu.pipeline_mode<synchronous>, transform_indices = @transform_3, window_bounds = array<i64: 256, 256>}, {pipeline_mode = #tpu.pipeline_mode<synchronous>, transform_indices = @transform_4, window_bounds = array<i64: 1, 256>}, {pipeline_mode = #tpu.pipeline_mode<synchronous>, transform_indices = @transform_5, window_bounds = array<i64: 256, 128>}, {pipeline_mode = #tpu.pipeline_mode<synchronous>, transform_indices = @transform_6, window_bounds = array<i64: 1, 128>}, {transform_indices = @transform_7, window_bounds = array<i64: 8, 128>}]} {
    %c0 = arith.constant 0 : index
    %c0_0 = arith.constant 0 : index
    %0 = vector.load %arg1[%c0, %c0_0] : memref<8x192xbf16, #tpu.memory_space<vmem>>, vector<8x192xbf16>
    %c0_1 = arith.constant 0 : index
    %c0_2 = arith.constant 0 : index
    %1 = vector.load %arg2[%c0_1, %c0_2] : memref<192x256xbf16, #tpu.memory_space<vmem>>, vector<192x256xbf16>
    %cst = arith.constant dense<0.000000e+00> : vector<8x256xf32>
    %2 = tpu.matmul %0, %1, %cst {dimension_numbers = #tpu.dot_dimension_numbers<[1], [0], [0], [1], [0, 0, 1, 1], [], []>} : vector<8x192xbf16>, vector<192x256xbf16>, vector<8x256xf32> -> vector<8x256xf32>
    %c0_3 = arith.constant 0 : index
    %c0_4 = arith.constant 0 : index
    %3 = vector.load %arg3[%c0_3, %c0_4] : memref<1x256xf32, #tpu.memory_space<vmem>>, vector<1x256xf32>
    %4 = vector.broadcast %3 : vector<1x256xf32> to vector<8x256xf32>
    %5 = arith.addf %2, %4 : vector<8x256xf32>
    %cst_5 = arith.constant 0.000000e+00 : f32
    %6 = vector.broadcast %cst_5 : f32 to vector<8x256xf32>
    %7 = arith.maximumf %5, %6 : vector<8x256xf32>
    %8 = arith.truncf %7 : vector<8x256xf32> to vector<8x256xbf16>
    %c0_6 = arith.constant 0 : index
    %c0_7 = arith.constant 0 : index
    %9 = vector.load %arg4[%c0_6, %c0_7] : memref<256x256xbf16, #tpu.memory_space<vmem>>, vector<256x256xbf16>
    %cst_8 = arith.constant dense<0.000000e+00> : vector<8x256xf32>
    %10 = tpu.matmul %8, %9, %cst_8 {dimension_numbers = #tpu.dot_dimension_numbers<[1], [0], [0], [1], [0, 0, 1, 1], [], []>} : vector<8x256xbf16>, vector<256x256xbf16>, vector<8x256xf32> -> vector<8x256xf32>
    %c0_9 = arith.constant 0 : index
    %c0_10 = arith.constant 0 : index
    %11 = vector.load %arg5[%c0_9, %c0_10] : memref<1x256xf32, #tpu.memory_space<vmem>>, vector<1x256xf32>
    %12 = vector.broadcast %11 : vector<1x256xf32> to vector<8x256xf32>
    %13 = arith.addf %10, %12 : vector<8x256xf32>
    %cst_11 = arith.constant 0.000000e+00 : f32
    %14 = vector.broadcast %cst_11 : f32 to vector<8x256xf32>
    %15 = arith.maximumf %13, %14 : vector<8x256xf32>
    %16 = arith.truncf %15 : vector<8x256xf32> to vector<8x256xbf16>
    %c0_12 = arith.constant 0 : index
    %c0_13 = arith.constant 0 : index
    %17 = vector.load %arg6[%c0_12, %c0_13] : memref<256x128xbf16, #tpu.memory_space<vmem>>, vector<256x128xbf16>
    %cst_14 = arith.constant dense<0.000000e+00> : vector<8x128xf32>
    %18 = tpu.matmul %16, %17, %cst_14 {dimension_numbers = #tpu.dot_dimension_numbers<[1], [0], [0], [1], [0, 0, 1, 1], [], []>} : vector<8x256xbf16>, vector<256x128xbf16>, vector<8x128xf32> -> vector<8x128xf32>
    %c0_15 = arith.constant 0 : index
    %c0_16 = arith.constant 0 : index
    %19 = vector.load %arg7[%c0_15, %c0_16] : memref<1x128xf32, #tpu.memory_space<vmem>>, vector<1x128xf32>
    %20 = vector.broadcast %19 : vector<1x128xf32> to vector<8x128xf32>
    %21 = arith.addf %18, %20 : vector<8x128xf32>
    %c0_17 = arith.constant 0 : index
    %c0_18 = arith.constant 0 : index
    %22 = vector.load %arg8[%c0_17, %c0_18] : memref<8x128xf32, #tpu.memory_space<vmem>>, vector<8x128xf32>
    tpu.vector_store %arg8[%c0_17, %c0_18], %21 {strides = array<i32>} : memref<8x128xf32, #tpu.memory_space<vmem>>, vector<8x128xf32>,
    return
  }
  func.func @transform_0(%arg0: i32) -> (i32, i32) {
    %c0_i32 = arith.constant 0 : i32
    %c0_i32_0 = arith.constant 0 : i32
    return %arg0, %c0_i32 : i32, i32
  }
  func.func @transform_1(%arg0: i32) -> (i32, i32) {
    %c0_i32 = arith.constant 0 : i32
    %c0_i32_0 = arith.constant 0 : i32
    %c0_i32_1 = arith.constant 0 : i32
    return %c0_i32, %c0_i32_0 : i32, i32
  }
  func.func @transform_2(%arg0: i32) -> (i32, i32) {
    %c0_i32 = arith.constant 0 : i32
    %c0_i32_0 = arith.constant 0 : i32
    %c0_i32_1 = arith.constant 0 : i32
    return %c0_i32, %c0_i32_0 : i32, i32
  }
  func.func @transform_3(%arg0: i32) -> (i32, i32) {
    %c0_i32 = arith.constant 0 : i32
    %c0_i32_0 = arith.constant 0 : i32
    %c0_i32_1 = arith.constant 0 : i32
    return %c0_i32, %c0_i32_0 : i32, i32
  }
  func.func @transform_4(%arg0: i32) -> (i32, i32) {
    %c0_i32 = arith.constant 0 : i32
    %c0_i32_0 = arith.constant 0 : i32
    %c0_i32_1 = arith.constant 0 : i32
    return %c0_i32, %c0_i32_0 : i32, i32
  }
  func.func @transform_5(%arg0: i32) -> (i32, i32) {
    %c0_i32 = arith.constant 0 : i32
    %c0_i32_0 = arith.constant 0 : i32
    %c0_i32_1 = arith.constant 0 : i32
    return %c0_i32, %c0_i32_0 : i32, i32
  }
  func.func @transform_6(%arg0: i32) -> (i32, i32) {
    %c0_i32 = arith.constant 0 : i32
    %c0_i32_0 = arith.constant 0 : i32
    %c0_i32_1 = arith.constant 0 : i32
    return %c0_i32, %c0_i32_0 : i32, i32
  }
  func.func @transform_7(%arg0: i32) -> (i32, i32) {
    %c0_i32 = arith.constant 0 : i32
    %c0_i32_0 = arith.constant 0 : i32
    return %arg0, %c0_i32 : i32, i32
  }
}

</mosaic_0001>

<bundles_post_ra>
// kernel: _lambda_.1
= control target key start
LH: loop header
LB: loop body
LE: loop exit
PB: predicated region body
PF: predicated region fallthrough
CT: control target
= control target key end

     0   :  { %s1235_s24 = smov 0   ;;  %s1490_s0 = inlined_call_operand.vmem [shape: bf16[16,192], index: 0, kind: input, shape index: {}]   ;;  %s1491_s1 = inlined_call_operand.vmem [shape: bf16[192,256], index: 1, kind: input, shape index: {}]   ;;  %s1492_s2 = inlined_call_operand.vmem [shape: f32[1,256], index: 2, kind: input, shape index: {}]   ;;  %s1493_s3 = inlined_call_operand.vmem [shape: bf16[256,256], index: 3, kind: input, shape index: {}]   ;;  %s1494_s4 = inlined_call_operand.vmem [shape: f32[1,256], index: 4, kind: input, shape index: {}]   ;;  %s1495_s5 = inlined_call_operand.vmem [shape: bf16[256,128], index: 5, kind: input, shape index: {}]   ;;  %s1496_s6 = inlined_call_operand.vmem [shape: f32[1,128], index: 6, kind: input, shape index: {}]   ;;  %s1497_s7 = inlined_call_operand.vmem [shape: f32[16,128], index: 7, kind: output, shape index: {}]  }
   0x1 LB: > { %s968_s25 = sadd.s32 4294967295, %s1193_s24   ;;  %p972_p0 = scmp.ge.s32.totalorder %s1193_s24, 1  ;;  %s1193_s24 = sphi %s1235_s24, %s17_s24  }
   0x2   : > { %p237_p1 = scmp.lt.s32.totalorder %s1193_s24, 3 }
   0x4   : > { %p238_p2 = pnand %p972_p0, %p237_p1 }
   0x5   : > { %v1085_v0 = vld [vmem:[%s1491_s1 + $0x4] ss:$8 sps:$4 sm:$0xff] (!%p238_p2)   ;;  %v1087_v1 = vld [vmem:[%s1491_s1] ss:$8 sps:$4 sm:$0xff] (!%p238_p2)   ;;  %v1088_v2 = vld [vmem:[%s1491_s1 + $0x14] ss:$8 sps:$4 sm:$0xff] (!%p238_p2)  }
   0x6   : > { %241 = sbr.rel (%p238_p2) target bundleno = 712 (0x2c8), region = 48  ;;  %445 = vmatprep.subr.bf16.mxu0 (!%p238_p2), %v1085_v0  ;;  %p268_p3 = scmp.lt.s32.totalorder (!%p238_p2), %s968_s25, 1  ;;  %v1090_v3 = vld [vmem:[%s1491_s1 + $0x10] ss:$8 sps:$4 sm:$0xff] (!%p238_p2)   ;;  %v1091_v4 = vld [vmem:[%s1491_s1 + $0x24] ss:$8 sps:$4 sm:$0xff] (!%p238_p2)  }
   0x7   : > { %446 = vmatpush1.bf16.msra.mxu0 (!%p238_p2), %v1087_v1  ;;  %v1093_v5 = vld [vmem:[%s1491_s1 + $0x20] ss:$8 sps:$4 sm:$0xff] (!%p238_p2)   ;;  %v1094_v6 = vld [vmem:[%s1491_s1 + $0x34] ss:$8 sps:$4 sm:$0xff] (!%p238_p2)   ;;  %v1096_v7 = vld [vmem:[%s1491_s1 + $0x30] ss:$8 sps:$4 sm:$0xff] (!%p238_p2)  }
   0x8   : > { %447 = vmatprep.subr.bf16.mxu0 (!%p238_p2), %v1088_v2  ;;  %v1097_v8 = vld [vmem:[%s1491_s1 + $0x44] ss:$8 sps:$4 sm:$0xff] (!%p238_p2)   ;;  %v1099_v9 = vld [vmem:[%s1491_s1 + $0x40] ss:$8 sps:$4 sm:$0xff] (!%p238_p2)   ;;  %v1100_v10 = vld [vmem:[%s1491_s1 + $0x54] ss:$8 sps:$4 sm:$0xff] (!%p238_p2)  }
   0x9   : > { %vm441_vm0 = vcmask (!%p238_p2), 523264   ;;  %v1123_v13 = vld [vmem:[%s1493_s3 + $0x4] ss:$8 sps:$4 sm:$0xff] (!%p238_p2)   ;;  %v1125_v14 = vld [vmem:[%s1493_s3] ss:$8 sps:$4 sm:$0xff] (!%p238_p2)   ;;  %v1175_v63 = vld [vmem:[%s1495_s5 + $0x50] sm:$0xff] (!%p238_p2)  }
   0xa   : > { %v1126_v15 = vld [vmem:[%s1493_s3 + $0x14] ss:$8 sps:$4 sm:$0xff] (!%p238_p2)   ;;  %v1102_v16 = vld [vmem:[%s1491_s1 + $0x50] ss:$8 sps:$4 sm:$0xff] (!%p238_p2)   ;;  %v1103_v17 = vld [vmem:[%s1491_s1 + $0x64] ss:$8 sps:$4 sm:$0xff] (!%p238_p2)   ;;  %694 = vmatprep.subr.bf16.mxu1 (!%p238_p2), %v1123_v13 }
   0xb   : > { %448 = vmatpush1.bf16.msra.mxu0 (!%p238_p2), %v1090_v3  ;;  %695 = vmatpush1.bf16.msra.mxu1 (!%p238_p2), %v1125_v14  ;;  %v1128_v18 = vld [vmem:[%s1493_s3 + $0x10] ss:$8 sps:$4 sm:$0xff] (!%p238_p2)   ;;  %v1129_v19 = vld [vmem:[%s1493_s3 + $0x24] ss:$8 sps:$4 sm:$0xff] (!%p238_p2)   ;;  %v1105_v20 = vld [vmem:[%s1491_s1 + $0x60] ss:$8 sps:$4 sm:$0xff] (!%p238_p2)  }
   0xc   : > { %449 = vmatprep.subr.bf16.mxu0 (!%p238_p2), %v1091_v4  ;;  %696 = vmatprep.subr.bf16.mxu1 (!%p238_p2), %v1126_v15  ;;  %v1106_v21 = vld [vmem:[%s1491_s1 + $0x74] ss:$8 sps:$4 sm:$0xff] (!%p238_p2)   ;;  %v1131_v22 = vld [vmem:[%s1493_s3 + $0x20] ss:$8 sps:$4 sm:$0xff] (!%p238_p2)   ;;  %v1108_v24 = vld [vmem:[%s1491_s1 + $0x70] ss:$8 sps:$4 sm:$0xff] (!%p238_p2)  }
   0xd   : > { %s1499_s25 = smov (!%p268_p3, %s968_s25), 1  ;;  %v1132_v23 = vld [vmem:[%s1493_s3 + $0x34] ss:$8 sps:$4 sm:$0xff]   ;;  %v1109_v25 = vld [vmem:[%s1491_s1 + $0x84] ss:$8 sps:$4 sm:$0xff]  }
   0xe   : > { %s1054_s17 = sshll.u32 %s1499_s25, 3  ;;  %v1134_v26 = vld [vmem:[%s1493_s3 + $0x30] ss:$8 sps:$4 sm:$0xff]   ;;  %v1135_v27 = vld [vmem:[%s1493_s3 + $0x44] ss:$8 sps:$4 sm:$0xff]  }
   0xf   : > { %450 = vmatpush1.bf16.msra.mxu0 %v1093_v5  ;;  %s272_s26 = scalar_lea.vmem %s1490_s0, %s1054_s17  ;;  %697 = vmatpush1.bf16.msra.mxu1 %v1128_v18  ;;  %v1111_v28 = vld [vmem:[%s1491_s1 + $0x80] ss:$8 sps:$4 sm:$0xff]   ;;  %v1112_v29 = vld [vmem:[%s1491_s1 + $0x94] ss:$8 sps:$4 sm:$0xff]   ;;  %v1114_v30 = vld [vmem:[%s1491_s1 + $0x90] ss:$8 sps:$4 sm:$0xff]   ;;  %s276_s19 = scalar_lea.vmem %s1497_s7, %s1054_s17 }
  0x10   : > { %451 = vmatprep.subr.bf16.mxu0 %v1094_v6  ;;  %v1284_v11 = vld [vmem:[%s272_s26] sm:$0xff]  ;;  %698 = vmatprep.subr.bf16.mxu1 %v1129_v19  ;;  %v1138_v33 = vld [vmem:[%s1493_s3 + $0x54] ss:$8 sps:$4 sm:$0xff]   ;;  %v1140_v34 = vld [vmem:[%s1493_s3 + $0x50] ss:$8 sps:$4 sm:$0xff]  }
  0x11   : > { %v977_v12 = vcombine.high %v1284_v11, %v1284_v11  ;;  %v1137_v31 = vld [vmem:[%s1493_s3 + $0x40] ss:$8 sps:$4 sm:$0xff]   ;;  %v1115_v32 = vld [vmem:[%s1491_s1 + $0xa4] ss:$8 sps:$4 sm:$0xff]   ;;  %v1118_v37 = vld [vmem:[%s1491_s1 + $0xb4] ss:$8 sps:$4 sm:$0xff]   ;;  %v976_v43 = vcombine.low %v1284_v11, %v1284_v11 }
  0x12   : > { %v1141_v35 = vld [vmem:[%s1493_s3 + $0x64] ss:$8 sps:$4 sm:$0xff]   ;;  %v1117_v36 = vld [vmem:[%s1491_s1 + $0xa0] ss:$8 sps:$4 sm:$0xff]   ;;  %v1144_v39 = vld [vmem:[%s1493_s3 + $0x74] ss:$8 sps:$4 sm:$0xff]  }
  0x13   : > { %452 = vmatpush1.bf16.msra.mxu0 %v1096_v7  ;;  %1002 = vmatprep.mubr.msk.bf16.mxu0 %vm441_vm0, %v977_v12  ;;  %v1143_v38 = vld [vmem:[%s1493_s3 + $0x60] ss:$8 sps:$4 sm:$0xff]   ;;  %v1120_v40 = vld [vmem:[%s1491_s1 + $0xb0] ss:$8 sps:$4 sm:$0xff]   ;;  %v1147_v42 = vld [vmem:[%s1493_s3 + $0x84] ss:$8 sps:$4 sm:$0xff]   ;;  %v305_v7 = vlaneseq }
  0x14   : > { %453 = vmatprep.subr.bf16.mxu0 %v1097_v8  ;;  %699 = vmatpush1.bf16.msra.mxu1 %v1131_v22  ;;  %v1146_v41 = vld [vmem:[%s1493_s3 + $0x70] ss:$8 sps:$4 sm:$0xff]   ;;  %v1149_v44 = vld [vmem:[%s1493_s3 + $0x80] ss:$8 sps:$4 sm:$0xff]   ;;  %v1150_v45 = vld [vmem:[%s1493_s3 + $0x94] ss:$8 sps:$4 sm:$0xff]  }
  0x15   : > { %700 = vmatprep.subr.bf16.mxu1 %v1132_v23  ;;  %v1152_v46 = vld [vmem:[%s1493_s3 + $0x90] ss:$8 sps:$4 sm:$0xff]   ;;  %v1153_v47 = vld [vmem:[%s1493_s3 + $0xa4] ss:$8 sps:$4 sm:$0xff]   ;;  %v1155_v48 = vld [vmem:[%s1493_s3 + $0xa0] ss:$8 sps:$4 sm:$0xff]  }
  0x16   : > { %v1156_v49 = vld [vmem:[%s1493_s3 + $0xb4] ss:$8 sps:$4 sm:$0xff]   ;;  %v1158_v50 = vld [vmem:[%s1493_s3 + $0xb0] ss:$8 sps:$4 sm:$0xff]   ;;  %v1159_v51 = vld [vmem:[%s1493_s3 + $0xc4] ss:$8 sps:$4 sm:$0xff]  }
  0x17   : > { %454 = vmatpush1.bf16.msra.mxu0 %v1099_v9  ;;  %v1161_v52 = vld [vmem:[%s1493_s3 + $0xc0] ss:$8 sps:$4 sm:$0xff]   ;;  %v1162_v53 = vld [vmem:[%s1493_s3 + $0xd4] ss:$8 sps:$4 sm:$0xff]   ;;  %v1164_v54 = vld [vmem:[%s1493_s3 + $0xd0] ss:$8 sps:$4 sm:$0xff]  }
  0x18   : > { %455 = vmatprep.subr.bf16.mxu0 %v1100_v10  ;;  %701 = vmatpush1.bf16.msra.mxu1 %v1134_v26  ;;  %v1165_v55 = vld [vmem:[%s1493_s3 + $0xe4] ss:$8 sps:$4 sm:$0xff]   ;;  %v1167_v56 = vld [vmem:[%s1493_s3 + $0xe0] ss:$8 sps:$4 sm:$0xff]   ;;  %v1168_v57 = vld [vmem:[%s1493_s3 + $0xf4] ss:$8 sps:$4 sm:$0xff]  }
  0x19   : > { %702 = vmatprep.subr.bf16.mxu1 %v1135_v27  ;;  %v1170_v58 = vld [vmem:[%s1493_s3 + $0xf0] ss:$8 sps:$4 sm:$0xff]   ;;  %v1171_v59 = vld [vmem:[%s1495_s5 + $0x40] sm:$0xff]   ;;  %v1173_v61 = vld [vmem:[%s1495_s5 + $0x48] sm:$0xff]   ;;  %v306_v8 = vshrl.u32 %v305_v7, 7 }
  0x1a   : > { %v1172_v60 = vld [vmem:[%s1495_s5] sm:$0xff]   ;;  %v1174_v62 = vld [vmem:[%s1495_s5 + $0x8] sm:$0xff]   ;;  %v1176_v0 = vld [vmem:[%s1495_s5 + $0x10] sm:$0xff]  }
  0x1b   : > { %456 = vmatpush1.bf16.msra.mxu0 %v1102_v16  ;;  %v1177_v1 = vld [vmem:[%s1495_s5 + $0x58] sm:$0xff]   ;;  %v1179_v3 = vld [vmem:[%s1495_s5 + $0x60] sm:$0xff]   ;;  %v1181_v5 = vld [vmem:[%s1495_s5 + $0x68] sm:$0xff]   ;;  %v307_v9 = vsub.s32 0, %v306_v8  ;;  %v311_v11 = vsub.s32 1, %v306_v8 }
  0x1c   : > { %457 = vmatprep.subr.bf16.mxu0 %v1103_v17  ;;  %703 = vmatpush1.bf16.msra.mxu1 %v1137_v31  ;;  %v1178_v2 = vld [vmem:[%s1495_s5 + $0x18] sm:$0xff]   ;;  %v1180_v4 = vld [vmem:[%s1495_s5 + $0x20] sm:$0xff]   ;;  %v1182_v6 = vld [vmem:[%s1495_s5 + $0x28] sm:$0xff]  }
  0x1d   : > { %704 = vmatprep.subr.bf16.mxu1 %v1138_v33  ;;  %v303_v10 = vld [vmem:[%s1492_s2] sm:$0x3]  ;;  %v1185_v26 = vld [vmem:[%s1495_s5 + $0x78] sm:$0xff]  }
  0x1e   : > { %v308_v12 = vrot.slane %v303_v10, %v307_v9  ;;  %v312_v13 = vrot.slane %v303_v10, %v311_v11  ;;  %v1186_v27 = vld [vmem:[%s1495_s5 + $0x38] sm:$0xff]  }
  0x1f   : > { %458 = vmatpush1.bf16.msra.mxu0 %v1105_v20 }
  0x20   : > { %459 = vmatprep.subr.bf16.mxu0 %v1106_v21  ;;  %705 = vmatpush1.bf16.msra.mxu1 %v1140_v34 }
  0x21   : > { %706 = vmatprep.subr.bf16.mxu1 %v1141_v35 }
  0x23   : > { %460 = vmatpush1.bf16.msra.mxu0 %v1108_v24  ;;  %v1183_v24 = vld [vmem:[%s1495_s5 + $0x70] sm:$0xff]  }
  0x24   : > { %461 = vmatprep.subr.bf16.mxu0 %v1109_v25  ;;  %707 = vmatpush1.bf16.msra.mxu1 %v1143_v38  ;;  %v1184_v25 = vld [vmem:[%s1495_s5 + $0x30] sm:$0xff]  }
  0x25   : > { %708 = vmatprep.subr.bf16.mxu1 %v1144_v39 }
  0x27   : > { %462 = vmatpush1.bf16.msra.mxu0 %v1111_v28  ;;  %v522_v28 = vld [vmem:[%s1494_s4] sm:$0x3] }
  0x28   : > { %463 = vmatprep.subr.bf16.mxu0 %v1112_v29  ;;  %709 = vmatpush1.bf16.msra.mxu1 %v1146_v41  ;;  %v527_v29 = vrot.slane %v522_v28, %v307_v9 }
  0x29   : > { %710 = vmatprep.subr.bf16.mxu1 %v1147_v42  ;;  %v1035_v42 = vld [vmem:[%s1496_s6] ss:$0 sm:$0xff] }
  0x2b   : > { %464 = vmatpush1.bf16.msra.mxu0 %v1114_v30  ;;  %v531_v30 = vrot.slane %v522_v28, %v311_v11 }
  0x2c   : > { %465 = vmatprep.subr.bf16.mxu0 %v1115_v32  ;;  %711 = vmatpush1.bf16.msra.mxu1 %v1149_v44 }
  0x2d   : > { %712 = vmatprep.subr.bf16.mxu1 %v1150_v45 }
  0x2f   : > { %466 = vmatpush1.bf16.msra.mxu0 %v1117_v36 }
  0x30   : > { %467 = vmatprep.subr.bf16.mxu0 %v1118_v37  ;;  %713 = vmatpush1.bf16.msra.mxu1 %v1152_v46 }
  0x31   : > { %714 = vmatprep.subr.bf16.mxu1 %v1153_v47 }
  0x33   : > { %468 = vmatpush1.bf16.msra.mxu0 %v1120_v40 }
  0x34   : > { %715 = vmatpush1.bf16.msra.mxu1 %v1155_v48  ;;  %1055 = vmatprep.subr.bf16.mxu0 %v1171_v59 }
  0x35   : > { %716 = vmatprep.subr.bf16.mxu1 %v1156_v49 }
  0x36   : > { %478 = vmatmul.mubr.bf16.vlgmr.msra.gmra.mrb[0].mxu0 %v976_v43 }
  0x37   : > { %1056 = vmatpush3.bf16.msra.mxu0 %v1172_v60 }
  0x38   : > { %717 = vmatpush1.bf16.msra.mxu1 %v1158_v50  ;;  %1057 = vmatprep.subr.bf16.mxu0 %v1173_v61 }
  0x39   : > { %718 = vmatprep.subr.bf16.mxu1 %v1159_v51 }
  0x3b   : > { %1058 = vmatpush3.bf16.msra.mxu0 %v1174_v62 }
  0x3c   : > { %719 = vmatpush1.bf16.msra.mxu1 %v1161_v52  ;;  %1059 = vmatprep.subr.bf16.mxu0 %v1175_v63 }
  0x3d   : > { %720 = vmatprep.subr.bf16.mxu1 %v1162_v53 }
  0x3f   : > { %1060 = vmatpush3.bf16.msra.mxu0 %v1176_v0 }
  0x40   : > { %721 = vmatpush1.bf16.msra.mxu1 %v1164_v54  ;;  %1061 = vmatprep.subr.bf16.mxu0 %v1177_v1 }
  0x41   : > { %722 = vmatprep.subr.bf16.mxu1 %v1165_v55 }
  0x43   : > { %1062 = vmatpush3.bf16.msra.mxu0 %v1178_v2 }
  0x44   : > { %723 = vmatpush1.bf16.msra.mxu1 %v1167_v56  ;;  %1063 = vmatprep.subr.bf16.mxu0 %v1179_v3 }
  0x45   : > { %724 = vmatprep.subr.bf16.mxu1 %v1168_v57 }
  0x47   : > { %1064 = vmatpush3.bf16.msra.mxu0 %v1180_v4 }
  0x48   : > { %725 = vmatpush1.bf16.msra.mxu1 %v1170_v58  ;;  %1065 = vmatprep.subr.bf16.mxu0 %v1181_v5 }
  0x4b   : > { %1066 = vmatpush3.bf16.msra.mxu0 %v1182_v6 }
  0x4c   : > { %1067 = vmatprep.subr.bf16.mxu0 %v1183_v24 }
  0x4f   : > { %1068 = vmatpush3.bf16.msra.mxu0 %v1184_v25 }
  0x50   : > { %1069 = vmatprep.subr.bf16.mxu0 %v1185_v26 }
  0x53   : > { %1070 = vmatpush3.bf16.msra.mxu0 %v1186_v27 }
 0x109   : > { %v479_v14 = vpop.f32.mrb[0].mxu0 }
 0x10a   : > { %v480_v15 = vadd.f32 %v479_v14, %v308_v12  ;;  %v481_v16 = vpop.f32.mrb[1].mxu0 }
 0x10b   : > { %v482_v17 = vadd.f32 %v481_v16, %v312_v13  ;;  %v483_v18 = vpop.f32.mrb[2].mxu0 }
 0x10c   : > { %v486_v19 = vmax.f32 %v480_v15, 0.0  ;;  %v484_v20 = vpop.f32.mrb[3].mxu0 }
 0x10d   : > { %v487_v21 = vmax.f32 %v482_v17, 0.0 }
 0x10e   : > { %v488_v23 = vpack.c.bf16 %v486_v19, %v486_v19 }
 0x10f   : > { %v489_v22 = vpack.c.bf16 %v487_v21, %v487_v21 }
 0x111   : > { %726 = vmatprep.mubr.bf16.mxu1 %v489_v22 }
 0x112   : > { %727 = vmatmul.mubr.bf16.vlgmr.msra.gmra.mrb[0].mxu1 %v488_v23 }
 0x1e5   : > { %v728_v31 = vpop.f32.mrb[0].mxu1 }
 0x1e6   : > { %v729_v32 = vadd.f32 %v728_v31, %v527_v29  ;;  %v730_v33 = vpop.f32.mrb[1].mxu1 }
 0x1e7   : > { %v731_v34 = vadd.f32 %v730_v33, %v531_v30  ;;  %v732_v35 = vpop.f32.mrb[2].mxu1 }
 0x1e8   : > { %v735_v36 = vmax.f32 %v729_v32, 0.0  ;;  %v733_v37 = vpop.f32.mrb[3].mxu1 }
 0x1e9   : > { %v736_v38 = vmax.f32 %v731_v34, 0.0 }
 0x1ea   : > { %v737_v40 = vpack.c.bf16 %v735_v36, %v735_v36 }
 0x1eb   : > { %v738_v39 = vpack.c.bf16 %v736_v38, %v736_v38 }
 0x1ed   : > { %906 = vmatprep.mubr.bf16.mxu0 %v738_v39 }
 0x1ee   : > { %907 = vmatmul.mubr.bf16.vlgmr.msra.gmra.mrb[4].mxu0 %v737_v40 }
 0x2c1   : > { %v1071_v41 = vpop.f32.mrb[4].mxu0 }
 0x2c2   : > { %v1072_v43 = vpop.f32.mrb[5].mxu0 }
 0x2c3   : > { %v1073_v44 = vadd.f32 %v1072_v43, %v1071_v41  ;;  %v1074_v45 = vpop.f32.mrb[6].mxu0 }
 0x2c4   : > { %v1075_v46 = vpop.f32.mrb[7].mxu0 }
 0x2c5   : > { %v909_v47 = vadd.f32 %v1073_v44, %v1035_v42 }
 0x2c7   : > { %914 = vst [vmem:[%s276_s19] sm:$0xff] %v909_v47 }
 0x2c8 PF: > { %s17_s24 = sadd.s32 1, %s1193_s24  }
 0x2c9   : > { %p14_p4 = scmp.ge.s32.totalorder %s17_s24, 4  }
 0x2cb   :  { %16 = sbr.rel (!%p14_p4) target bundleno = 1 (0x1), region = 78 }

</bundles_post_ra>
